<compile_context>
chip_gen: v7x
topology: tpu7x:2x2x1
jax: 0.10.0
libtpu: 0.0.40
codegen_flags: <defaults>
</compile_context>

<pallas_src>
import math

import jax
import jax.numpy as jnp
from jax.experimental import pallas as pl
from jax.experimental.pallas import tpu as pltpu


# ----------------------------------------------------------------------------
# Kernel: broadcast add of one pe row-block onto a (tb, tl) x block.
# ----------------------------------------------------------------------------
def _pe_add_kernel(x_ref, pe_ref, o_ref):
    # jnp promotion handles mixed dtypes (e.g. bf16 x + f32 pe -> f32).
    o_ref[...] = (x_ref[...] + pe_ref[...]).astype(o_ref.dtype)


# ----------------------------------------------------------------------------
# Tiling plan: one byte budget per block, dtype-aware sublane unit, padding.
# ----------------------------------------------------------------------------
def _round_up(v, m):
    return ((v + m - 1) // m) * m


def _plan_tiles(B, L, itemsize, unit, budget_bytes):
    """Returns (tb, tl, Bp, Lp): block shape and padded array shape."""
    # Lane tile: prefer the full flattened row if one (b_min x L) strip fits.
    b_min = B if B <= unit else unit
    tl_cap = max(128, (budget_bytes // (b_min * itemsize)) // 128 * 128)
    tl = min(_round_up(L, 128), tl_cap)
    Lp = _round_up(L, tl)

    # Sublane tile: grow batch rows until the block hits the budget.
    if B <= unit:
        tb, Bp = B, B                      # full-extent second-minor dim is legal
    else:
        rows = max(1, budget_bytes // (tl * itemsize))
        tb = max(unit, (rows // unit) * unit)
        tb = min(tb, _round_up(B, unit))
        Bp = _round_up(B, tb)

    # Keep >=2 grid steps on some axis for medium/large inputs so v7x's two
    # TensorCores can split the (parallel, parallel) grid.
    if Bp == tb and Lp == tl and Bp * Lp * itemsize > (1 << 20):
        if Lp >= 256 and (Lp // 128) % 2 == 0:
            tl //= 2
        elif tb > unit and (tb // unit) % 2 == 0:
            tb //= 2

    assert tl % 128 == 0
    assert Lp % tl == 0 and Bp % tb == 0
    return tb, tl, Bp, Lp


# ----------------------------------------------------------------------------
# pe table (identical to the PyTorch __init__ buffer; hidden_dim even).
# ----------------------------------------------------------------------------
def make_positional_encoding_table(hidden_dim, max_len=1000, dtype=jnp.float32):
    position = jnp.arange(max_len, dtype=jnp.float32)[:, None]                  # [L, 1]
    div_term = jnp.exp(
        jnp.arange(0, hidden_dim, 2, dtype=jnp.float32)
        * (-math.log(10000.0) / hidden_dim))                                    # [D/2]
    args = position * div_term                                                  # [L, D/2]
    pe = jnp.zeros((max_len, hidden_dim), jnp.float32)
    pe = pe.at[:, 0::2].set(jnp.sin(args))
    pe = pe.at[:, 1::2].set(jnp.cos(args))
    return pe.astype(dtype)


# ----------------------------------------------------------------------------
# Forward pass.
# ----------------------------------------------------------------------------
def positional_encoding_forward(x, pe_flat, hidden_dim, *,
                                block_budget_bytes=2 << 20,
                                donate_x=False,
                                min_pallas_bytes=0):
    """x: [B, S, D]; pe_flat: [1, max_len*D] (row-major flatten of the pe buffer).

    Returns x + pe[:S] broadcast over the batch, dtype = promote(x, pe)."""
    B, S, D = x.shape
    assert D == hidden_dim
    L = S * D
    assert L <= pe_flat.shape[-1], "seq_len exceeds max_len"

    out_dtype = jnp.promote_types(x.dtype, pe_flat.dtype)
    x2 = x.reshape(B, L)                     # lane-dense view (contiguous)
    pe2 = pe_flat[:, :L]                     # [1, L]  (slice of the cached flat table)

    # Tiny-input fallback: pallas_call dispatch cost dominates at KiB sizes.
    if B * L * jnp.dtype(out_dtype).itemsize < min_pallas_bytes:
        return (x2 + pe2).astype(out_dtype).reshape(B, S, D)

    itemsizes = (jnp.dtype(x.dtype).itemsize,
                 jnp.dtype(pe_flat.dtype).itemsize,
                 jnp.dtype(out_dtype).itemsize)
    budget_itemsize = max(itemsizes)               # bound the widest stream
    unit = max(8, 32 // min(itemsizes))            # 8 f32 / 16 bf16 / 32 int8-fp8

    tb, tl, Bp, Lp = _plan_tiles(B, L, budget_itemsize, unit, block_budget_bytes)

    padded = (Bp, Lp) != (B, L)
    if padded:
        x2 = jnp.pad(x2, ((0, Bp - B), (0, Lp - L)))
        pe2 = jnp.pad(pe2, ((0, 0), (0, Lp - L)))

    grid = (Lp // tl, Bp // tb)                    # batch innermost -> pe block reused
    assert grid[0] * tl == Lp and grid[1] * tb == Bp

    aliases = {}
    if donate_x and not padded and jnp.dtype(x.dtype) == jnp.dtype(out_dtype):
        aliases = {0: 0}

    out2 = pl.pallas_call(
        _pe_add_kernel,
        out_shape=jax.ShapeDtypeStruct((Bp, Lp), out_dtype),
        grid=grid,
        in_specs=[
            pl.BlockSpec((tb, tl), lambda j, i: (i, j)),   # x
            pl.BlockSpec((1, tl), lambda j, i: (0, j)),    # pe (broadcast over rows)
        ],
        out_specs=pl.BlockSpec((tb, tl), lambda j, i: (i, j)),
        input_output_aliases=aliases,
        compiler_params=pltpu.CompilerParams(
            dimension_semantics=("parallel", "parallel"),
            vmem_limit_bytes=32 << 20),
    )(x2, pe2)

    if padded:
        out2 = out2[:B, :L]
    return out2.reshape(B, S, D)


class PositionalEncoding:
    """JAX/Pallas port of the PyTorch module; pe buffer built & flattened once."""

    def __init__(self, hidden_dim, max_len=1000, dtype=jnp.float32):
        self.hidden_dim = hidden_dim
        self.max_len = max_len
        self.pe = make_positional_encoding_table(hidden_dim, max_len, dtype)     # [max_len, D]
        self.pe_flat = self.pe.reshape(1, max_len * hidden_dim)                  # hoisted

    def __call__(self, x, **kwargs):
        return positional_encoding_forward(x, self.pe_flat, self.hidden_dim, **kwargs)


if __name__ == "__main__":
    key = jax.random.PRNGKey(0)

    # Main check: aligned shape (L = S*D = 512, multiple of 128).
    batch, seq_len, hidden_dim, max_len = 4, 16, 32, 64
    penc = PositionalEncoding(hidden_dim, max_len=max_len)
    x = jax.random.normal(key, (batch, seq_len, hidden_dim), jnp.float32)

    out = penc(x)
    jax.block_until_ready(out)

    ref = x + penc.pe[None, :seq_len, :]
    assert out.shape == (batch, seq_len, hidden_dim)
    assert out.dtype == x.dtype
    assert bool(jnp.all(jnp.isfinite(out)))
    assert bool(jnp.allclose(out, ref, atol=1e-6, rtol=1e-6))

    # Second check: awkward shape exercising the padding path (L=70, B=20).
    b2, s2, d2 = 20, 7, 10
    penc2 = PositionalEncoding(d2, max_len=32)
    x2 = jax.random.normal(jax.random.PRNGKey(1), (b2, s2, d2), jnp.float32)
    out2 = penc2(x2)
    jax.block_until_ready(out2)
    ref2 = x2 + penc2.pe[None, :s2, :]
    assert out2.shape == (b2, s2, d2)
    assert bool(jnp.allclose(out2, ref2, atol=1e-6, rtol=1e-6))

    print("KERNEL_OK")
</pallas_src>

<mosaic_0001>
module attributes {stable_mosaic.version = 11 : i64} {
  func.func @_pe_add_kernel(%arg0: i32, %arg1: i32, %arg2: memref<4x512xf32, #tpu.memory_space<vmem>>, %arg3: memref<1x512xf32, #tpu.memory_space<vmem>>, %arg4: memref<4x512xf32, #tpu.memory_space<vmem>>) attributes {dimension_semantics = [#tpu.dimension_semantics<parallel>, #tpu.dimension_semantics<parallel>], iteration_bounds = array<i64: 1, 1>, scalar_prefetch = 0 : i64, scratch_operands = 0 : i64, tpu.core_type = #tpu.core_type<tc>, window_params = [{transform_indices = @transform_0, window_bounds = array<i64: 4, 512>}, {transform_indices = @transform_1, window_bounds = array<i64: 1, 512>}, {transform_indices = @transform_2, window_bounds = array<i64: 4, 512>}]} {
    %c0 = arith.constant 0 : index
    %c0_0 = arith.constant 0 : index
    %0 = vector.load %arg2[%c0, %c0_0] : memref<4x512xf32, #tpu.memory_space<vmem>>, vector<4x512xf32>
    %c0_1 = arith.constant 0 : index
    %c0_2 = arith.constant 0 : index
    %1 = vector.load %arg3[%c0_1, %c0_2] : memref<1x512xf32, #tpu.memory_space<vmem>>, vector<1x512xf32>
    %2 = vector.broadcast %1 : vector<1x512xf32> to vector<4x512xf32>
    %3 = arith.addf %0, %2 : vector<4x512xf32>
    %c0_3 = arith.constant 0 : index
    %c0_4 = arith.constant 0 : index
    %4 = vector.load %arg4[%c0_3, %c0_4] : memref<4x512xf32, #tpu.memory_space<vmem>>, vector<4x512xf32>
    tpu.vector_store %arg4[%c0_3, %c0_4], %3 {strides = array<i32>} : memref<4x512xf32, #tpu.memory_space<vmem>>, vector<4x512xf32>,
    return
  }
  func.func @transform_0(%arg0: i32, %arg1: i32) -> (i32, i32) {
    %c0_i32 = arith.constant 0 : i32
    return %arg1, %arg0 : i32, i32
  }
  func.func @transform_1(%arg0: i32, %arg1: i32) -> (i32, i32) {
    %c0_i32 = arith.constant 0 : i32
    %c0_i32_0 = arith.constant 0 : i32
    return %c0_i32, %arg0 : i32, i32
  }
  func.func @transform_2(%arg0: i32, %arg1: i32) -> (i32, i32) {
    %c0_i32 = arith.constant 0 : i32
    return %arg1, %arg0 : i32, i32
  }
}

</mosaic_0001>

<bundles_post_ra>
// kernel: tpu_custom_call.1
= control target key start
LH: loop header
LB: loop body
LE: loop exit
PB: predicated region body
PF: predicated region fallthrough
CT: control target
= control target key end

     0   :  { %7 = vsyncpa [#allocation3], 0  ;;  %s209_s0 = inlined_call_operand.hbm [shape: f32[4,512], index: 0, kind: input, shape index: {}]   ;;  %s210_s1 = inlined_call_operand.hbm [shape: f32[1,512], index: 1, kind: input, shape index: {}]   ;;  %s211_s2 = inlined_call_operand.hbm [shape: f32[4,512], index: 2, kind: output, shape index: {}]  }
   0x1   :  { %8 = vsyncpa [#allocation6], 0 }
   0x2   :  { %9 = vsyncpa [#allocation4], 0  ;;  %s155_s9 = smov [#allocation2]   ;;  %s156_s11 = smov [#allocation5]  }
   0x3   :  { %s16_s10 = sshll.u32 %s155_s9, 4  ;;  %s26_s12 = sshll.u32 %s156_s11, 4  ;;  %s17_s10 = int_to_ptr.vmem [resolvable:$true] %s16_s10  ;;  %s27_s12 = int_to_ptr.vmem [resolvable:$true] %s26_s12 }
   0x4   :  { %s83_s15 = scalar_lea.hbm %s209_s0, 256 }
   0x5   :  { %p84_p0 = scmp.ne.s32.totalorder %s209_s0, %s83_s15  ;;  %p87_p1 = scmp.lt.u32.totalorder %s83_s15, %s209_s0 }
   0x7   :  { %p89_p2 = pnand %p87_p1, %p84_p0 }
   0x9   :  { %92 = shalt.err (!%p89_p2)
}
   0xa   :  { %s93_s20 = scalar_lea.vmem %s17_s10, 256  ;;  %p98_p4 = scmp.lt.s32.totalorder %s17_s10, %s17_s10 }
   0xb   :  { %p94_p3 = scmp.ne.s32.totalorder %s17_s10, %s93_s20  ;;  %p99_p5 = scmp.lt.s32.totalorder %s93_s20, %s93_s20 }
   0xd   :  { %p100_p6 = por %p99_p5, %p98_p4 }
   0xf   :  { %p101_p7 = pnand %p100_p6, %p94_p3 }
  0x11   :  { %104 = shalt.err (!%p101_p7)
}
  0x12   :  { %19 = dma.hbm_to_vmem [thread:$0]  %s209_s0, 256, %s17_s10, [#allocation3]  }
  0x13   :  { %s105_s25 = scalar_lea.hbm %s210_s1, 64 }
  0x14   :  { %p106_p8 = scmp.ne.s32.totalorder %s210_s1, %s105_s25  ;;  %p109_p9 = scmp.lt.u32.totalorder %s105_s25, %s210_s1 }
  0x16   :  { %p111_p10 = pnand %p109_p9, %p106_p8 }
  0x18   :  { %114 = shalt.err (!%p111_p10)
}
  0x19   :  { %s115_s30 = scalar_lea.vmem %s27_s12, 64  ;;  %p120_p12 = scmp.lt.s32.totalorder %s27_s12, %s27_s12 }
  0x1a   :  { %p116_p11 = scmp.ne.s32.totalorder %s27_s12, %s115_s30  ;;  %p121_p13 = scmp.lt.s32.totalorder %s115_s30, %s115_s30 }
  0x1c   :  { %p122_p0 = por %p121_p13, %p120_p12 }
  0x1e   :  { %p123_p1 = pnand %p122_p0, %p116_p11 }
  0x20   :  { %126 = shalt.err (!%p123_p1)
}
  0x21   :  { %29 = dma.hbm_to_vmem [thread:$0]  %s210_s1, 64, %s27_s12, [#allocation6]  }
  0x22   :  { %149 = dma.done.wait [#allocation3], 256  }
  0x23   :  { %150 = vsyncadd [#allocation3], 4294967040 }
  0x24   :  { %151 = dma.done.wait [#allocation6], 64  }
  0x25   :  { %152 = vsyncadd [#allocation6], 4294967232  ;;  %v40_v0 = vlaneseq  ;;  %v38_v6 = vld [vmem:[#allocation5] sm:$0xf]  ;;  %v36_v11 = vld [vmem:[#allocation2] sm:$0xff]  ;;  %s157_s4 = smov [#allocation7]  }
  0x26   :  { %v37_v12 = vld [vmem:[#allocation2 + $0x8] sm:$0xff]  ;;  %s70_s5 = sshll.u32 %s157_s4, 4  ;;  %s71_s5 = int_to_ptr.vmem [resolvable:$true] %s70_s5 }
  0x27   :  { %v41_v1 = vshrl.u32 %v40_v0, 7  ;;  %s127_s1 = scalar_lea.vmem %s71_s5, 256  ;;  %p132_p3 = scmp.lt.s32.totalorder %s71_s5, %s71_s5 }
  0x28   :  { %p128_p2 = scmp.ne.s32.totalorder %s71_s5, %s127_s1  ;;  %p133_p4 = scmp.lt.s32.totalorder %s127_s1, %s127_s1 }
  0x29   :  { %v42_v2 = vsub.s32 0, %v41_v1  ;;  %v46_v3 = vsub.s32 1, %v41_v1  ;;  %v50_v4 = vsub.s32 2, %v41_v1  ;;  %v54_v5 = vsub.s32 3, %v41_v1 }
  0x2a   :  { %p134_p5 = por %p133_p4, %p132_p3 }
  0x2b   :  { %v43_v7 = vrot.slane %v38_v6, %v42_v2  ;;  %v47_v8 = vrot.slane %v38_v6, %v46_v3  ;;  %v51_v9 = vrot.slane %v38_v6, %v50_v4  ;;  %v55_v10 = vrot.slane %v38_v6, %v54_v5 }
  0x2c   :  { %p135_p6 = pnand %p134_p5, %p128_p2 }
  0x2d   :  { %v56_v13 = vcombine.low %v43_v7, %v47_v8  ;;  %v57_v14 = vcombine.low %v51_v9, %v55_v10 }
  0x2f   :  { %v60_v15 = vadd.f32 %v56_v13, %v36_v11  ;;  %v61_v16 = vadd.f32 %v57_v14, %v37_v12 }
  0x31   :  { %62 = vst [vmem:[#allocation7] sm:$0xff] %v60_v15  ;;  %63 = vst [vmem:[#allocation7 + $0x8] sm:$0xff] %v61_v16 }
  0x32   :  { %138 = shalt.err (!%p135_p6)
}
  0x33   :  { %s139_s8 = scalar_lea.hbm %s211_s2, 256 }
  0x34   :  { %p140_p7 = scmp.ne.s32.totalorder %s211_s2, %s139_s8  ;;  %p143_p8 = scmp.lt.u32.totalorder %s139_s8, %s211_s2 }
  0x36   :  { %p145_p9 = pnand %p143_p8, %p140_p7 }
  0x38   :  { %148 = shalt.err (!%p145_p9)
}
  0x39   :  { %73 = dma.vmem_to_hbm [thread:$0]  %s71_s5, 256, %s211_s2, [#allocation4]  }
  0x3a   :  { %153 = dma.done.wait [#allocation4], 256  }
  0x3b   :  { %154 = vsyncadd [#allocation4], 4294967040 }
  0x3c   :  { %77 = vsyncpa [#allocation3], 1 }
  0x3d   :  { %78 = vsyncpa [#allocation6], 1 }
  0x3e   :  { %79 = vsyncpa [#allocation4], 1 }

</bundles_post_ra>
